<compile_context>
chip_gen: v7x
topology: tpu7x:2x2x1
jax: 0.10.0
libtpu: 0.0.40
codegen_flags: <defaults>
</compile_context>

<pallas_src>
import functools

import jax
import jax.numpy as jnp
from jax import lax
from jax.experimental import pallas as pl
from jax.experimental.pallas import tpu as pltpu


def _round_up(x, m):
    return ((x + m - 1) // m) * m


def _cdiv(a, b):
    return -(-a // b)


def _attention_ff_kernel(projm_ref, projd_ref, mem_ref, va_ref, out_ref,
                         e_ref, m_ref, l_ref, acc_ref,
                         *, t_tile, s_tile, src_len, needs_mask):
    """Grid = (B, T blocks, S blocks); S is the innermost (arbitrary) axis.

    projm_ref : (D8, S_TILE)   memory @ W_m^T, transposed (D on sublanes, S lane-dense)
    projd_ref : (D8, T_TILE)   decoder @ W_d^T, transposed (D on sublanes)
    mem_ref   : (S_TILE, E_pad)
    va_ref    : (D8, 1)
    out_ref   : (T_TILE, E_pad)
    scratch   : e (T_TILE, S_TILE), m/l (T_TILE, 1), acc (T_TILE, E_pad)
    """
    s_blk = pl.program_id(2)
    n_s = pl.num_programs(2)

    @pl.when(s_blk == 0)
    def _init():
        # Finite "-inf" keeps every exp() argument finite (no inf-inf NaNs).
        m_ref[...] = jnp.full(m_ref.shape, -1e30, jnp.float32)
        l_ref[...] = jnp.zeros(l_ref.shape, jnp.float32)
        acc_ref[...] = jnp.zeros(acc_ref.shape, jnp.float32)

    pm = projm_ref[...].astype(jnp.float32)                     # (D8, S_TILE)
    pd = projd_ref[...].astype(jnp.float32)                     # (D8, T_TILE)
    va = va_ref[...].astype(jnp.float32)                        # (D8, 1)
    lane_ids = lax.broadcasted_iota(jnp.int32, pd.shape, 1)     # hoisted

    # e[t, s] = sum_d va[d] * tanh(pd[d, t] + pm[d, s])
    # D sits on the sublane axis (padded to 8, not 128) and S is lane-dense,
    # so only a (D8, S_TILE) plane is live per row -- no (T, S, D) VMEM slab.
    for t in range(t_tile):                                     # static unroll
        # Column t of pd as a (D8, 1) vector via mask + lane-reduce
        # (exact, avoids cross-lane relayout primitives).
        pd_col = jnp.sum(jnp.where(lane_ids == t, pd, 0.0),
                         axis=1, keepdims=True)                 # (D8, 1)
        plane = jnp.tanh(pd_col + pm)                           # (D8, S_TILE)  EUP
        e_row = jnp.sum(plane * va, axis=0, keepdims=True)      # (1, S_TILE)
        e_ref[pl.ds(t, 1), :] = e_row

    e = e_ref[...]                                              # (T_TILE, S_TILE)
    if needs_mask:
        col = lax.broadcasted_iota(jnp.int32, e.shape, 1) + s_blk * s_tile
        e = jnp.where(col < src_len, e, -jnp.inf)
    # TODO(synk): the module's optional boolean `mask` argument (masked_fill
    # with -inf) is not plumbed through; mask=None (the default) is exact.

    # Flash-style online softmax across the S grid axis.
    mem = mem_ref[...]
    m_prev = m_ref[...]
    m_new = jnp.maximum(m_prev, jnp.max(e, axis=-1, keepdims=True))
    alpha = jnp.exp(m_prev - m_new)
    p = jnp.exp(e - m_new)                                      # (T_TILE, S_TILE)
    l_ref[...] = alpha * l_ref[...] + jnp.sum(p, axis=-1, keepdims=True)
    acc_ref[...] = alpha * acc_ref[...] + jnp.dot(
        p.astype(mem.dtype), mem, preferred_element_type=jnp.float32)
    m_ref[...] = m_new

    @pl.when(s_blk == n_s - 1)
    def _finalize():
        l = l_ref[...]
        inv_l = pl.reciprocal(l, approx=True)                   # EUP vrcp
        inv_l = inv_l * (2.0 - l * inv_l)                       # one Newton step
        out_ref[...] = (acc_ref[...] * inv_l).astype(out_ref.dtype)


def attention_feedforward(memory, decoder_state, wa_weight, va_weight):
    """memory: (B,S,E), decoder_state: (B,T,D),
    wa_weight: (D, D+E) torch nn.Linear layout (cat order [decoder, memory]),
    va_weight: (1, D).  Returns (B, T, E) context."""
    B, S, E = memory.shape
    B2, T, D = decoder_state.shape
    assert B2 == B
    assert wa_weight.shape == (D, D + E)
    assert va_weight.shape[-1] == D
    f32 = jnp.float32

    E_pad = _round_up(E, 128)          # lane-dense output / context matmul N
    D8 = _round_up(D, 8)               # D lives on sublanes -> pad to 8 only

    # ---- tile selection -------------------------------------------------
    T8 = _round_up(T, 8)
    T_TILE = min(T8, 128)
    # keep >=2 blocks on the parallel axes so v7x's two TensorCores both work
    if B * _cdiv(T8, T_TILE) < 2 and T8 >= 16:
        T_TILE = _round_up(_cdiv(T8, 2), 8)
    T_pad = _cdiv(T, T_TILE) * T_TILE
    n_t = T_pad // T_TILE

    S8 = _round_up(S, 8)
    S_TILE = S8 if S8 <= 512 else 512
    S_pad = _cdiv(S, S_TILE) * S_TILE
    n_s = S_pad // S_TILE
    needs_mask = (S_pad != S)

    # ---- projections hoisted out of the kernel (full-size XLA matmuls) ---
    hp = jax.lax.Precision.HIGHEST
    w_d = wa_weight[:, :D].astype(f32)                          # decoder part
    w_m = wa_weight[:, D:].astype(f32)                          # memory part
    proj_d = jnp.einsum('btk,dk->bdt', decoder_state.astype(f32), w_d,
                        precision=hp)                           # (B, D, T)
    proj_m = jnp.einsum('bse,de->bds', memory.astype(f32), w_m,
                        precision=hp)                           # (B, D, S)

    # ---- pad & lay out for the kernel (D on sublanes, S/T lane-dense) ----
    proj_d = jnp.pad(proj_d, ((0, 0), (0, D8 - D), (0, T_pad - T)))
    # expose T blocks as their own (leading) axis so any T_TILE is legal
    proj_d = proj_d.reshape(B, D8, n_t, T_TILE).transpose(0, 2, 1, 3)
    proj_d = proj_d.reshape(B * n_t, D8, T_TILE)                # (B*nT, D8, T_TILE)
    proj_m = jnp.pad(proj_m, ((0, 0), (0, D8 - D), (0, S_pad - S)))   # (B, D8, S_pad)
    mem_p = jnp.pad(memory, ((0, 0), (0, S_pad - S), (0, E_pad - E)))  # (B, S_pad, E_pad)
    va_col = jnp.pad(va_weight.reshape(D, 1).astype(f32), ((0, D8 - D), (0, 0)))

    kernel = functools.partial(
        _attention_ff_kernel,
        t_tile=T_TILE, s_tile=S_TILE, src_len=S, needs_mask=needs_mask)

    out_p = pl.pallas_call(
        kernel,
        out_shape=jax.ShapeDtypeStruct((B, T_pad, E_pad), memory.dtype),
        grid_spec=pltpu.PrefetchScalarGridSpec(
            num_scalar_prefetch=0,
            grid=(B, n_t, n_s),
            in_specs=[
                # proj_m block streams along the S (reduction) axis
                pl.BlockSpec((None, D8, S_TILE), lambda b, t, s: (b, 0, s)),
                # proj_d block is constant across S -> stays resident
                pl.BlockSpec((None, D8, T_TILE),
                             lambda b, t, s, _n=n_t: (b * _n + t, 0, 0)),
                # memory block for the context matmul
                pl.BlockSpec((None, S_TILE, E_pad), lambda b, t, s: (b, s, 0)),
                # Va column: constant -> resident
                pl.BlockSpec((D8, 1), lambda b, t, s: (0, 0)),
            ],
            # same output block across the S axis -> accumulator-resident
            out_specs=pl.BlockSpec((None, T_TILE, E_pad), lambda b, t, s: (b, t, 0)),
            scratch_shapes=[
                pltpu.VMEM((T_TILE, S_TILE), jnp.float32),   # e scores
                pltpu.VMEM((T_TILE, 1), jnp.float32),        # running max
                pltpu.VMEM((T_TILE, 1), jnp.float32),        # running sum
                pltpu.VMEM((T_TILE, E_pad), jnp.float32),    # context accumulator
            ],
        ),
        compiler_params=pltpu.CompilerParams(
            dimension_semantics=("parallel", "parallel", "arbitrary"),
            vmem_limit_bytes=32 * 1024 * 1024,
        ),
    )(proj_m, proj_d, mem_p, va_col)

    return out_p[:, :T, :E]


def _reference(memory, decoder_state, wa_weight, va_weight):
    """Pure-JAX replica of the PyTorch forward (method='feedforward', mask=None)."""
    B, S, E = memory.shape
    _, T, D = decoder_state.shape
    hp = jax.lax.Precision.HIGHEST
    d = jnp.broadcast_to(decoder_state[:, :, None, :], (B, T, S, D))
    m = jnp.broadcast_to(memory[:, None, :, :], (B, T, S, E))
    cat = jnp.concatenate([d, m], axis=-1)                                # (B,T,S,D+E)
    e = jnp.einsum("btsi,oi->btso", cat, wa_weight, precision=hp)         # (B,T,S,D)
    e = jnp.einsum("btsd,od->btso", jnp.tanh(e), va_weight,
                   precision=hp)[..., 0]                                  # (B,T,S)
    a = jax.nn.softmax(e, axis=-1)
    return jnp.einsum("bts,bse->bte", a, memory, precision=hp)


def _run_case(key, B, S, T, enc_dim, dec_dim):
    k_mem, k_dec, k_wa, k_va = jax.random.split(key, 4)
    memory = jax.random.normal(k_mem, (B, S, enc_dim), dtype=jnp.float32)
    decoder_state = jax.random.normal(k_dec, (B, T, dec_dim), dtype=jnp.float32)
    wa_weight = (jax.random.normal(k_wa, (dec_dim, enc_dim + dec_dim), dtype=jnp.float32)
                 * (1.0 / jnp.sqrt(enc_dim + dec_dim)))
    va_weight = (jax.random.normal(k_va, (1, dec_dim), dtype=jnp.float32)
                 * (1.0 / jnp.sqrt(dec_dim)))

    out = attention_feedforward(memory, decoder_state, wa_weight, va_weight)
    out = jax.block_until_ready(out)

    ref = _reference(memory, decoder_state, wa_weight, va_weight)
    assert out.shape == (B, T, enc_dim)
    err = float(jnp.max(jnp.abs(out - ref)))
    assert jnp.allclose(out, ref, atol=2e-3, rtol=2e-3), (
        f"mismatch vs reference (max abs err {err}) for shapes "
        f"B={B} S={S} T={T} E={enc_dim} D={dec_dim}")


if __name__ == "__main__":
    key = jax.random.PRNGKey(0)
    k1, k2, k3 = jax.random.split(key, 3)

    # Small aligned case (matches the module's typical toy config).
    _run_case(k1, B=2, S=8, T=8, enc_dim=32, dec_dim=32)
    # Unaligned dims: exercises D/E/T/S padding and the padded-S softmax mask.
    _run_case(k2, B=2, S=20, T=12, enc_dim=48, dec_dim=40)
    # Long S: multiple S blocks (online softmax across the grid), multiple
    # T blocks (the B=1 split keeps both v7x TensorCores busy), mask on the
    # ragged last S block.
    _run_case(k3, B=1, S=1100, T=20, enc_dim=64, dec_dim=48)

    print("KERNEL_OK")
</pallas_src>

<mosaic_0001>
module attributes {stable_mosaic.version = 11 : i64} {
  func.func @_attention_ff_kernel(%arg0: i32, %arg1: i32, %arg2: i32, %arg3: memref<1x32x8xf32, #tpu.memory_space<vmem>>, %arg4: memref<1x32x8xf32, #tpu.memory_space<vmem>>, %arg5: memref<1x8x128xf32, #tpu.memory_space<vmem>>, %arg6: memref<32x1xf32, #tpu.memory_space<vmem>>, %arg7: memref<1x8x128xf32, #tpu.memory_space<vmem>>, %arg8: memref<8x8xf32, #tpu.memory_space<vmem>>, %arg9: memref<8x1xf32, #tpu.memory_space<vmem>>, %arg10: memref<8x1xf32, #tpu.memory_space<vmem>>, %arg11: memref<8x128xf32, #tpu.memory_space<vmem>>) attributes {dimension_semantics = [#tpu.dimension_semantics<parallel>, #tpu.dimension_semantics<parallel>, #tpu.dimension_semantics<arbitrary>], iteration_bounds = array<i64: 2, 1, 1>, scalar_prefetch = 0 : i64, scratch_operands = 4 : i64, tpu.core_type = #tpu.core_type<tc>, window_params = [{transform_indices = @transform_0, window_bounds = array<i64: 1, 32, 8>}, {transform_indices = @transform_1, window_bounds = array<i64: 1, 32, 8>}, {transform_indices = @transform_2, window_bounds = array<i64: 1, 8, 128>}, {pipeline_mode = #tpu.pipeline_mode<synchronous>, transform_indices = @transform_3, window_bounds = array<i64: 32, 1>}, {transform_indices = @transform_4, window_bounds = array<i64: 1, 8, 128>}]} {
    %c0_i32 = arith.constant 0 : i32
    %0 = arith.cmpi eq, %arg2, %c0_i32 : i32
    %1 = arith.extui %0 : i1 to i32
    %c0_i32_0 = arith.constant 0 : i32
    %2 = arith.cmpi ne, %1, %c0_i32_0 : i32
    scf.if %2 {
      %cst_63 = arith.constant -1.000000e+30 : f32
      %149 = vector.broadcast %cst_63 : f32 to vector<8x1xf32>
      %c0_64 = arith.constant 0 : index
      %c0_65 = arith.constant 0 : index
      %150 = vector.load %arg9[%c0_64, %c0_65] : memref<8x1xf32, #tpu.memory_space<vmem>>, vector<8x1xf32>
      tpu.vector_store %arg9[%c0_64, %c0_65], %149 {strides = array<i32>} : memref<8x1xf32, #tpu.memory_space<vmem>>, vector<8x1xf32>,
      %cst_66 = arith.constant 0.000000e+00 : f32
      %151 = vector.broadcast %cst_66 : f32 to vector<8x1xf32>
      %c0_67 = arith.constant 0 : index
      %c0_68 = arith.constant 0 : index
      %152 = vector.load %arg10[%c0_67, %c0_68] : memref<8x1xf32, #tpu.memory_space<vmem>>, vector<8x1xf32>
      tpu.vector_store %arg10[%c0_67, %c0_68], %151 {strides = array<i32>} : memref<8x1xf32, #tpu.memory_space<vmem>>, vector<8x1xf32>,
      %cst_69 = arith.constant 0.000000e+00 : f32
      %153 = vector.broadcast %cst_69 : f32 to vector<8x128xf32>
      %c0_70 = arith.constant 0 : index
      %c0_71 = arith.constant 0 : index
      %154 = vector.load %arg11[%c0_70, %c0_71] : memref<8x128xf32, #tpu.memory_space<vmem>>, vector<8x128xf32>
      tpu.vector_store %arg11[%c0_70, %c0_71], %153 {strides = array<i32>} : memref<8x128xf32, #tpu.memory_space<vmem>>, vector<8x128xf32>,
    } else {
    }
    %c0 = arith.constant 0 : index
    %c0_1 = arith.constant 0 : index
    %c0_2 = arith.constant 0 : index
    %3 = vector.load %arg3[%c0, %c0_1, %c0_2] : memref<1x32x8xf32, #tpu.memory_space<vmem>>, vector<1x32x8xf32>
    %4 = vector.shape_cast %3 : vector<1x32x8xf32> to vector<32x8xf32>
    %c0_3 = arith.constant 0 : index
    %c0_4 = arith.constant 0 : index
    %c0_5 = arith.constant 0 : index
    %5 = vector.load %arg4[%c0_3, %c0_4, %c0_5] : memref<1x32x8xf32, #tpu.memory_space<vmem>>, vector<1x32x8xf32>
    %6 = vector.shape_cast %5 : vector<1x32x8xf32> to vector<32x8xf32>
    %c0_6 = arith.constant 0 : index
    %c0_7 = arith.constant 0 : index
    %7 = vector.load %arg6[%c0_6, %c0_7] : memref<32x1xf32, #tpu.memory_space<vmem>>, vector<32x1xf32>
    %8 = tpu.iota {dimensions = array<i32: 1>} : vector<32x8xi32>
    %c0_i32_8 = arith.constant 0 : i32
    %9 = vector.broadcast %c0_i32_8 : i32 to vector<32x8xi32>
    %10 = arith.cmpi eq, %8, %9 : vector<32x8xi32>
    %cst = arith.constant 0.000000e+00 : f32
    %11 = vector.broadcast %cst : f32 to vector<32x8xf32>
    %12 = arith.select %10, %6, %11 : vector<32x8xi1>, vector<32x8xf32>
    %cst_9 = arith.constant dense<0.000000e+00> : vector<32xf32>
    %13 = vector.multi_reduction <add>, %12, %cst_9 [1] : vector<32x8xf32> to vector<32xf32>
    %14 = vector.shape_cast %13 : vector<32xf32> to vector<32x1xf32>
    %15 = vector.broadcast %14 : vector<32x1xf32> to vector<32x8xf32>
    %16 = arith.addf %15, %4 : vector<32x8xf32>
    %17 = math.tanh %16 : vector<32x8xf32>
    %18 = vector.broadcast %7 : vector<32x1xf32> to vector<32x8xf32>
    %19 = arith.mulf %17, %18 : vector<32x8xf32>
    %cst_10 = arith.constant dense<0.000000e+00> : vector<8xf32>
    %20 = vector.multi_reduction <add>, %19, %cst_10 [0] : vector<32x8xf32> to vector<8xf32>
    %21 = vector.shape_cast %20 : vector<8xf32> to vector<1x8xf32>
    %c0_11 = arith.constant 0 : index
    %c0_12 = arith.constant 0 : index
    %22 = vector.load %arg8[%c0_11, %c0_12] : memref<8x8xf32, #tpu.memory_space<vmem>>, vector<1x8xf32>
    tpu.vector_store %arg8[%c0_11, %c0_12], %21 {strides = array<i32>} : memref<8x8xf32, #tpu.memory_space<vmem>>, vector<1x8xf32>,
    %c1_i32 = arith.constant 1 : i32
    %23 = vector.broadcast %c1_i32 : i32 to vector<32x8xi32>
    %24 = arith.cmpi eq, %8, %23 : vector<32x8xi32>
    %cst_13 = arith.constant 0.000000e+00 : f32
    %25 = vector.broadcast %cst_13 : f32 to vector<32x8xf32>
    %26 = arith.select %24, %6, %25 : vector<32x8xi1>, vector<32x8xf32>
    %cst_14 = arith.constant dense<0.000000e+00> : vector<32xf32>
    %27 = vector.multi_reduction <add>, %26, %cst_14 [1] : vector<32x8xf32> to vector<32xf32>
    %28 = vector.shape_cast %27 : vector<32xf32> to vector<32x1xf32>
    %29 = vector.broadcast %28 : vector<32x1xf32> to vector<32x8xf32>
    %30 = arith.addf %29, %4 : vector<32x8xf32>
    %31 = math.tanh %30 : vector<32x8xf32>
    %32 = vector.broadcast %7 : vector<32x1xf32> to vector<32x8xf32>
    %33 = arith.mulf %31, %32 : vector<32x8xf32>
    %cst_15 = arith.constant dense<0.000000e+00> : vector<8xf32>
    %34 = vector.multi_reduction <add>, %33, %cst_15 [0] : vector<32x8xf32> to vector<8xf32>
    %35 = vector.shape_cast %34 : vector<8xf32> to vector<1x8xf32>
    %c1 = arith.constant 1 : index
    %c0_16 = arith.constant 0 : index
    %36 = vector.load %arg8[%c1, %c0_16] : memref<8x8xf32, #tpu.memory_space<vmem>>, vector<1x8xf32>
    tpu.vector_store %arg8[%c1, %c0_16], %35 {strides = array<i32>} : memref<8x8xf32, #tpu.memory_space<vmem>>, vector<1x8xf32>,
    %c2_i32 = arith.constant 2 : i32
    %37 = vector.broadcast %c2_i32 : i32 to vector<32x8xi32>
    %38 = arith.cmpi eq, %8, %37 : vector<32x8xi32>
    %cst_17 = arith.constant 0.000000e+00 : f32
    %39 = vector.broadcast %cst_17 : f32 to vector<32x8xf32>
    %40 = arith.select %38, %6, %39 : vector<32x8xi1>, vector<32x8xf32>
    %cst_18 = arith.constant dense<0.000000e+00> : vector<32xf32>
    %41 = vector.multi_reduction <add>, %40, %cst_18 [1] : vector<32x8xf32> to vector<32xf32>
    %42 = vector.shape_cast %41 : vector<32xf32> to vector<32x1xf32>
    %43 = vector.broadcast %42 : vector<32x1xf32> to vector<32x8xf32>
    %44 = arith.addf %43, %4 : vector<32x8xf32>
    %45 = math.tanh %44 : vector<32x8xf32>
    %46 = vector.broadcast %7 : vector<32x1xf32> to vector<32x8xf32>
    %47 = arith.mulf %45, %46 : vector<32x8xf32>
    %cst_19 = arith.constant dense<0.000000e+00> : vector<8xf32>
    %48 = vector.multi_reduction <add>, %47, %cst_19 [0] : vector<32x8xf32> to vector<8xf32>
    %49 = vector.shape_cast %48 : vector<8xf32> to vector<1x8xf32>
    %c2 = arith.constant 2 : index
    %c0_20 = arith.constant 0 : index
    %50 = vector.load %arg8[%c2, %c0_20] : memref<8x8xf32, #tpu.memory_space<vmem>>, vector<1x8xf32>
    tpu.vector_store %arg8[%c2, %c0_20], %49 {strides = array<i32>} : memref<8x8xf32, #tpu.memory_space<vmem>>, vector<1x8xf32>,
    %c3_i32 = arith.constant 3 : i32
    %51 = vector.broadcast %c3_i32 : i32 to vector<32x8xi32>
    %52 = arith.cmpi eq, %8, %51 : vector<32x8xi32>
    %cst_21 = arith.constant 0.000000e+00 : f32
    %53 = vector.broadcast %cst_21 : f32 to vector<32x8xf32>
    %54 = arith.select %52, %6, %53 : vector<32x8xi1>, vector<32x8xf32>
    %cst_22 = arith.constant dense<0.000000e+00> : vector<32xf32>
    %55 = vector.multi_reduction <add>, %54, %cst_22 [1] : vector<32x8xf32> to vector<32xf32>
    %56 = vector.shape_cast %55 : vector<32xf32> to vector<32x1xf32>
    %57 = vector.broadcast %56 : vector<32x1xf32> to vector<32x8xf32>
    %58 = arith.addf %57, %4 : vector<32x8xf32>
    %59 = math.tanh %58 : vector<32x8xf32>
    %60 = vector.broadcast %7 : vector<32x1xf32> to vector<32x8xf32>
    %61 = arith.mulf %59, %60 : vector<32x8xf32>
    %cst_23 = arith.constant dense<0.000000e+00> : vector<8xf32>
    %62 = vector.multi_reduction <add>, %61, %cst_23 [0] : vector<32x8xf32> to vector<8xf32>
    %63 = vector.shape_cast %62 : vector<8xf32> to vector<1x8xf32>
    %c3 = arith.constant 3 : index
    %c0_24 = arith.constant 0 : index
    %64 = vector.load %arg8[%c3, %c0_24] : memref<8x8xf32, #tpu.memory_space<vmem>>, vector<1x8xf32>
    tpu.vector_store %arg8[%c3, %c0_24], %63 {strides = array<i32>} : memref<8x8xf32, #tpu.memory_space<vmem>>, vector<1x8xf32>,
    %c4_i32 = arith.constant 4 : i32
    %65 = vector.broadcast %c4_i32 : i32 to vector<32x8xi32>
    %66 = arith.cmpi eq, %8, %65 : vector<32x8xi32>
    %cst_25 = arith.constant 0.000000e+00 : f32
    %67 = vector.broadcast %cst_25 : f32 to vector<32x8xf32>
    %68 = arith.select %66, %6, %67 : vector<32x8xi1>, vector<32x8xf32>
    %cst_26 = arith.constant dense<0.000000e+00> : vector<32xf32>
    %69 = vector.multi_reduction <add>, %68, %cst_26 [1] : vector<32x8xf32> to vector<32xf32>
    %70 = vector.shape_cast %69 : vector<32xf32> to vector<32x1xf32>
    %71 = vector.broadcast %70 : vector<32x1xf32> to vector<32x8xf32>
    %72 = arith.addf %71, %4 : vector<32x8xf32>
    %73 = math.tanh %72 : vector<32x8xf32>
    %74 = vector.broadcast %7 : vector<32x1xf32> to vector<32x8xf32>
    %75 = arith.mulf %73, %74 : vector<32x8xf32>
    %cst_27 = arith.constant dense<0.000000e+00> : vector<8xf32>
    %76 = vector.multi_reduction <add>, %75, %cst_27 [0] : vector<32x8xf32> to vector<8xf32>
    %77 = vector.shape_cast %76 : vector<8xf32> to vector<1x8xf32>
    %c4 = arith.constant 4 : index
    %c0_28 = arith.constant 0 : index
    %78 = vector.load %arg8[%c4, %c0_28] : memref<8x8xf32, #tpu.memory_space<vmem>>, vector<1x8xf32>
    tpu.vector_store %arg8[%c4, %c0_28], %77 {strides = array<i32>} : memref<8x8xf32, #tpu.memory_space<vmem>>, vector<1x8xf32>,
    %c5_i32 = arith.constant 5 : i32
    %79 = vector.broadcast %c5_i32 : i32 to vector<32x8xi32>
    %80 = arith.cmpi eq, %8, %79 : vector<32x8xi32>
    %cst_29 = arith.constant 0.000000e+00 : f32
    %81 = vector.broadcast %cst_29 : f32 to vector<32x8xf32>
    %82 = arith.select %80, %6, %81 : vector<32x8xi1>, vector<32x8xf32>
    %cst_30 = arith.constant dense<0.000000e+00> : vector<32xf32>
    %83 = vector.multi_reduction <add>, %82, %cst_30 [1] : vector<32x8xf32> to vector<32xf32>
    %84 = vector.shape_cast %83 : vector<32xf32> to vector<32x1xf32>
    %85 = vector.broadcast %84 : vector<32x1xf32> to vector<32x8xf32>
    %86 = arith.addf %85, %4 : vector<32x8xf32>
    %87 = math.tanh %86 : vector<32x8xf32>
    %88 = vector.broadcast %7 : vector<32x1xf32> to vector<32x8xf32>
    %89 = arith.mulf %87, %88 : vector<32x8xf32>
    %cst_31 = arith.constant dense<0.000000e+00> : vector<8xf32>
    %90 = vector.multi_reduction <add>, %89, %cst_31 [0] : vector<32x8xf32> to vector<8xf32>
    %91 = vector.shape_cast %90 : vector<8xf32> to vector<1x8xf32>
    %c5 = arith.constant 5 : index
    %c0_32 = arith.constant 0 : index
    %92 = vector.load %arg8[%c5, %c0_32] : memref<8x8xf32, #tpu.memory_space<vmem>>, vector<1x8xf32>
    tpu.vector_store %arg8[%c5, %c0_32], %91 {strides = array<i32>} : memref<8x8xf32, #tpu.memory_space<vmem>>, vector<1x8xf32>,
    %c6_i32 = arith.constant 6 : i32
    %93 = vector.broadcast %c6_i32 : i32 to vector<32x8xi32>
    %94 = arith.cmpi eq, %8, %93 : vector<32x8xi32>
    %cst_33 = arith.constant 0.000000e+00 : f32
    %95 = vector.broadcast %cst_33 : f32 to vector<32x8xf32>
    %96 = arith.select %94, %6, %95 : vector<32x8xi1>, vector<32x8xf32>
    %cst_34 = arith.constant dense<0.000000e+00> : vector<32xf32>
    %97 = vector.multi_reduction <add>, %96, %cst_34 [1] : vector<32x8xf32> to vector<32xf32>
    %98 = vector.shape_cast %97 : vector<32xf32> to vector<32x1xf32>
    %99 = vector.broadcast %98 : vector<32x1xf32> to vector<32x8xf32>
    %100 = arith.addf %99, %4 : vector<32x8xf32>
    %101 = math.tanh %100 : vector<32x8xf32>
    %102 = vector.broadcast %7 : vector<32x1xf32> to vector<32x8xf32>
    %103 = arith.mulf %101, %102 : vector<32x8xf32>
    %cst_35 = arith.constant dense<0.000000e+00> : vector<8xf32>
    %104 = vector.multi_reduction <add>, %103, %cst_35 [0] : vector<32x8xf32> to vector<8xf32>
    %105 = vector.shape_cast %104 : vector<8xf32> to vector<1x8xf32>
    %c6 = arith.constant 6 : index
    %c0_36 = arith.constant 0 : index
    %106 = vector.load %arg8[%c6, %c0_36] : memref<8x8xf32, #tpu.memory_space<vmem>>, vector<1x8xf32>
    tpu.vector_store %arg8[%c6, %c0_36], %105 {strides = array<i32>} : memref<8x8xf32, #tpu.memory_space<vmem>>, vector<1x8xf32>,
    %c7_i32 = arith.constant 7 : i32
    %107 = vector.broadcast %c7_i32 : i32 to vector<32x8xi32>
    %108 = arith.cmpi eq, %8, %107 : vector<32x8xi32>
    %cst_37 = arith.constant 0.000000e+00 : f32
    %109 = vector.broadcast %cst_37 : f32 to vector<32x8xf32>
    %110 = arith.select %108, %6, %109 : vector<32x8xi1>, vector<32x8xf32>
    %cst_38 = arith.constant dense<0.000000e+00> : vector<32xf32>
    %111 = vector.multi_reduction <add>, %110, %cst_38 [1] : vector<32x8xf32> to vector<32xf32>
    %112 = vector.shape_cast %111 : vector<32xf32> to vector<32x1xf32>
    %113 = vector.broadcast %112 : vector<32x1xf32> to vector<32x8xf32>
    %114 = arith.addf %113, %4 : vector<32x8xf32>
    %115 = math.tanh %114 : vector<32x8xf32>
    %116 = vector.broadcast %7 : vector<32x1xf32> to vector<32x8xf32>
    %117 = arith.mulf %115, %116 : vector<32x8xf32>
    %cst_39 = arith.constant dense<0.000000e+00> : vector<8xf32>
    %118 = vector.multi_reduction <add>, %117, %cst_39 [0] : vector<32x8xf32> to vector<8xf32>
    %119 = vector.shape_cast %118 : vector<8xf32> to vector<1x8xf32>
    %c7 = arith.constant 7 : index
    %c0_40 = arith.constant 0 : index
    %120 = vector.load %arg8[%c7, %c0_40] : memref<8x8xf32, #tpu.memory_space<vmem>>, vector<1x8xf32>
    tpu.vector_store %arg8[%c7, %c0_40], %119 {strides = array<i32>} : memref<8x8xf32, #tpu.memory_space<vmem>>, vector<1x8xf32>,
    %c0_41 = arith.constant 0 : index
    %c0_42 = arith.constant 0 : index
    %121 = vector.load %arg8[%c0_41, %c0_42] : memref<8x8xf32, #tpu.memory_space<vmem>>, vector<8x8xf32>
    %c0_43 = arith.constant 0 : index
    %c0_44 = arith.constant 0 : index
    %c0_45 = arith.constant 0 : index
    %122 = vector.load %arg5[%c0_43, %c0_44, %c0_45] : memref<1x8x128xf32, #tpu.memory_space<vmem>>, vector<1x8x128xf32>
    %123 = vector.shape_cast %122 : vector<1x8x128xf32> to vector<8x128xf32>
    %c0_46 = arith.constant 0 : index
    %c0_47 = arith.constant 0 : index
    %124 = vector.load %arg9[%c0_46, %c0_47] : memref<8x1xf32, #tpu.memory_space<vmem>>, vector<8x1xf32>
    %cst_48 = arith.constant dense<0xFF800000> : vector<8xf32>
    %125 = vector.multi_reduction <maximumf>, %121, %cst_48 [1] : vector<8x8xf32> to vector<8xf32>
    %126 = vector.shape_cast %125 : vector<8xf32> to vector<8x1xf32>
    %127 = arith.maximumf %124, %126 : vector<8x1xf32>
    %128 = arith.subf %124, %127 : vector<8x1xf32>
    %129 = math.exp %128 : vector<8x1xf32>
    %130 = vector.broadcast %127 : vector<8x1xf32> to vector<8x8xf32>
    %131 = arith.subf %121, %130 : vector<8x8xf32>
    %132 = math.exp %131 : vector<8x8xf32>
    %c0_49 = arith.constant 0 : index
    %c0_50 = arith.constant 0 : index
    %133 = vector.load %arg10[%c0_49, %c0_50] : memref<8x1xf32, #tpu.memory_space<vmem>>, vector<8x1xf32>
    %134 = arith.mulf %129, %133 : vector<8x1xf32>
    %cst_51 = arith.constant dense<0.000000e+00> : vector<8xf32>
    %135 = vector.multi_reduction <add>, %132, %cst_51 [1] : vector<8x8xf32> to vector<8xf32>
    %136 = vector.shape_cast %135 : vector<8xf32> to vector<8x1xf32>
    %137 = arith.addf %134, %136 : vector<8x1xf32>
    %c0_52 = arith.constant 0 : index
    %c0_53 = arith.constant 0 : index
    %138 = vector.load %arg10[%c0_52, %c0_53] : memref<8x1xf32, #tpu.memory_space<vmem>>, vector<8x1xf32>
    tpu.vector_store %arg10[%c0_52, %c0_53], %137 {strides = array<i32>} : memref<8x1xf32, #tpu.memory_space<vmem>>, vector<8x1xf32>,
    %c0_54 = arith.constant 0 : index
    %c0_55 = arith.constant 0 : index
    %139 = vector.load %arg11[%c0_54, %c0_55] : memref<8x128xf32, #tpu.memory_space<vmem>>, vector<8x128xf32>
    %140 = vector.broadcast %129 : vector<8x1xf32> to vector<8x128xf32>
    %141 = arith.mulf %140, %139 : vector<8x128xf32>
    %cst_56 = arith.constant dense<0.000000e+00> : vector<8x128xf32>
    %142 = tpu.matmul %132, %123, %cst_56 {dimension_numbers = #tpu.dot_dimension_numbers<[1], [0], [0], [1], [0, 0, 1, 1], [], []>} : vector<8x8xf32>, vector<8x128xf32>, vector<8x128xf32> -> vector<8x128xf32>
    %143 = arith.addf %141, %142 : vector<8x128xf32>
    %c0_57 = arith.constant 0 : index
    %c0_58 = arith.constant 0 : index
    %144 = vector.load %arg11[%c0_57, %c0_58] : memref<8x128xf32, #tpu.memory_space<vmem>>, vector<8x128xf32>
    tpu.vector_store %arg11[%c0_57, %c0_58], %143 {strides = array<i32>} : memref<8x128xf32, #tpu.memory_space<vmem>>, vector<8x128xf32>,
    %c0_59 = arith.constant 0 : index
    %c0_60 = arith.constant 0 : index
    %145 = vector.load %arg9[%c0_59, %c0_60] : memref<8x1xf32, #tpu.memory_space<vmem>>, vector<8x1xf32>
    tpu.vector_store %arg9[%c0_59, %c0_60], %127 {strides = array<i32>} : memref<8x1xf32, #tpu.memory_space<vmem>>, vector<8x1xf32>,
    %c0_i32_61 = arith.constant 0 : i32
    %146 = arith.cmpi eq, %arg2, %c0_i32_61 : i32
    %147 = arith.extui %146 : i1 to i32
    %c0_i32_62 = arith.constant 0 : i32
    %148 = arith.cmpi ne, %147, %c0_i32_62 : i32
    scf.if %148 {
      %c0_63 = arith.constant 0 : index
      %c0_64 = arith.constant 0 : index
      %149 = vector.load %arg10[%c0_63, %c0_64] : memref<8x1xf32, #tpu.memory_space<vmem>>, vector<8x1xf32>
      %150 = tpu.reciprocal %149 {approx = true} : vector<8x1xf32> -> vector<8x1xf32>
      %151 = arith.mulf %149, %150 : vector<8x1xf32>
      %cst_65 = arith.constant 2.000000e+00 : f32
      %152 = vector.broadcast %cst_65 : f32 to vector<8x1xf32>
      %153 = arith.subf %152, %151 : vector<8x1xf32>
      %154 = arith.mulf %150, %153 : vector<8x1xf32>
      %c0_66 = arith.constant 0 : index
      %c0_67 = arith.constant 0 : index
      %155 = vector.load %arg11[%c0_66, %c0_67] : memref<8x128xf32, #tpu.memory_space<vmem>>, vector<8x128xf32>
      %156 = vector.broadcast %154 : vector<8x1xf32> to vector<8x128xf32>
      %157 = arith.mulf %155, %156 : vector<8x128xf32>
      %c0_68 = arith.constant 0 : index
      %c0_69 = arith.constant 0 : index
      %c0_70 = arith.constant 0 : index
      %158 = vector.load %arg7[%c0_68, %c0_69, %c0_70] : memref<1x8x128xf32, #tpu.memory_space<vmem>>, vector<1x8x128xf32>
      %159 = vector.shape_cast %158 : vector<1x8x128xf32> to vector<8x128xf32>
      %160 = vector.shape_cast %157 : vector<8x128xf32> to vector<1x8x128xf32>
      tpu.vector_store %arg7[%c0_68, %c0_69, %c0_70], %160 {strides = array<i32>} : memref<1x8x128xf32, #tpu.memory_space<vmem>>, vector<1x8x128xf32>,
    } else {
    }
    return
  }
  func.func @transform_0(%arg0: i32, %arg1: i32, %arg2: i32) -> (i32, i32, i32) {
    %c0_i32 = arith.constant 0 : i32
    %c0_i32_0 = arith.constant 0 : i32
    return %arg0, %c0_i32, %arg2 : i32, i32, i32
  }
  func.func @transform_1(%arg0: i32, %arg1: i32, %arg2: i32) -> (i32, i32, i32) {
    %c1_i32 = arith.constant 1 : i32
    %0 = arith.muli %arg0, %c1_i32 : i32
    %1 = arith.addi %0, %arg1 : i32
    %c0_i32 = arith.constant 0 : i32
    %c0_i32_0 = arith.constant 0 : i32
    %c0_i32_1 = arith.constant 0 : i32
    return %1, %c0_i32, %c0_i32_0 : i32, i32, i32
  }
  func.func @transform_2(%arg0: i32, %arg1: i32, %arg2: i32) -> (i32, i32, i32) {
    %c0_i32 = arith.constant 0 : i32
    %c0_i32_0 = arith.constant 0 : i32
    return %arg0, %arg2, %c0_i32 : i32, i32, i32
  }
  func.func @transform_3(%arg0: i32, %arg1: i32, %arg2: i32) -> (i32, i32) {
    %c0_i32 = arith.constant 0 : i32
    %c0_i32_0 = arith.constant 0 : i32
    %c0_i32_1 = arith.constant 0 : i32
    return %c0_i32, %c0_i32_0 : i32, i32
  }
  func.func @transform_4(%arg0: i32, %arg1: i32, %arg2: i32) -> (i32, i32, i32) {
    %c0_i32 = arith.constant 0 : i32
    %c0_i32_0 = arith.constant 0 : i32
    return %arg0, %arg1, %c0_i32 : i32, i32, i32
  }
}

</mosaic_0001>

<bundles_post_ra>
// kernel: tpu_custom_call.1
= control target key start
LH: loop header
LB: loop body
LE: loop exit
PB: predicated region body
PF: predicated region fallthrough
CT: control target
= control target key end

     0   :  { %9 = vsyncpa [#allocation7], 0  ;;  %s1526_s0 = inlined_call_operand.vmem [shape: f32[2,32,8], index: 0, kind: input, shape index: {}]   ;;  %s1527_s1 = inlined_call_operand.vmem [shape: f32[2,32,8], index: 1, kind: input, shape index: {}]   ;;  %s1528_s2 = inlined_call_operand.vmem [shape: f32[2,8,128], index: 2, kind: input, shape index: {}]   ;;  %s1529_s3 = inlined_call_operand.vmem [shape: f32[32,1], index: 3, kind: input, shape index: {}]   ;;  %s1530_s4 = inlined_call_operand.hbm [shape: f32[2,8,128], index: 4, kind: output, shape index: {}]  }
   0x1   :  { %11 = vsyncpa [#allocation7 + $0x1], 0  ;;  %s1181_s15 = smov 0   ;;  %s1183_s16 = smov 0  }
   0x2   :  { %s1185_s17 = smov 0   ;;  %s1187_s18 = smov 0  }
   0x3   :  { %s1189_s19 = smov 0   ;;  %s1191_s20 = smov 0  }
   0x4 LB: > { %s915_s21 = sadd.s32 4294967295, %s1149_s20   ;;  %s916_s22 = sadd.s32 4294967294, %s1149_s20   ;;  %s1149_s20 = sphi %s1191_s20, %s17_s20   ;;  %s1145_s19 = sphi %s1189_s19, %s1537_s19   ;;  %s1141_s18 = sphi %s1187_s18, %s1536_s18   ;;  %s1137_s17 = sphi %s1185_s17, %s1535_s17   ;;  %s1133_s16 = sphi %s1183_s16, %s1534_s16   ;;  %s1129_s15 = sphi %s1181_s15, %s1533_s15  }
   0x5   : > { %s36_s23 = sadd.s32 1, %s1145_s19  ;;  %s150_s24 = sadd.s32 1, %s1137_s17 }
   0x6   : > { %p38_p0 = scmp.ge.s32.totalorder %s36_s23, 2  ;;  %p160_p1 = scmp.ne.s32.totalorder %s1137_s17, %s1133_s16 }
   0x7   : > { %p161_p2 = scmp.eq.s32.totalorder %s915_s21, 1  ;;  %p166_p3 = scmp.ne.s32.totalorder %s1133_s16, %s1129_s15 }
   0x8   : > { %s1539_s23 = smov (%p38_p0, %s36_s23), 0  ;;  %p167_p5 = scmp.eq.s32.totalorder %s916_s22, 1 }
   0x9   : > { %p1221_p4 = por %p161_p2, %p160_p1  ;;  %s145_s26 = ssub.s32 %s1145_s19, %s1539_s23 }
   0xa   : > { %p919_p6 = scmp.ge.s32.totalorder %s1149_s20, 1  ;;  %p148_p7 = scmp.eq.s32.totalorder %s145_s26, 0 }
   0xb   : > { %p1228_p8 = por %p167_p5, %p166_p3  ;;  %p219_p9 = scmp.lt.s32.totalorder %s1149_s20, 3 }
   0xc   : > { %s1234_s28 = scalar_select %p148_p7, %s1137_s17, %s150_s24  }
   0xd   : > { %p220_p10 = pnand %p919_p6, %p219_p9 }
   0xe   : > { %p261_p11 = scmp.lt.s32.totalorder (!%p220_p10), %s1141_s18, 1  ;;  %v303_v0 = vlaneseq (!%p220_p10)  ;;  %v1151_v1 = vmov (!%p220_p10), 0   ;;  %vm310_vm2 = vcmask (!%p220_p10), 64512   ;;  %vm287_vm9 = vcmask (!%p220_p10), 7168   ;;  %s928_s9 = sshll.u32 (!%p220_p10), %s1141_s18, 7 }
   0xf   : > { %223 = sbr.rel (%p220_p10) target bundleno = 889 (0x379), region = 36  ;;  %1000 = vset.pattern.permute.xlu1 (!%p220_p10), %v1151_v1  ;;  %999 = vset.pattern.permute.xlu0 (!%p220_p10), %v1151_v1  ;;  %vm368_vm10 = vcmask (!%p220_p10), 57344   ;;  %vm1154_vm11 = vmmov (!%p220_p10), 0   ;;  %s1479_s14 = scalar_lea.hbm (!%p220_p10), %s1530_s4, %s928_s9 }
  0x10   : > { %v1240_v2 = vand.u32 (!%p220_p10), 127, %v303_v0 }
  0x12   : > { %vm370_vm0 = vcmp.eq.s32.totalorder (!%p220_p10), %v1240_v2, 1  ;;  %vm305_vm1 = vcmp.eq.s32.totalorder (!%p220_p10), %v1240_v2, 0  ;;  %vm413_vm3 = vcmp.eq.s32.totalorder (!%p220_p10), %v1240_v2, 2  ;;  %vm456_vm4 = vcmp.eq.s32.totalorder (!%p220_p10), %v1240_v2, 3 }
  0x13   : > { %vm499_vm5 = vcmp.eq.s32.totalorder (!%p220_p10), %v1240_v2, 4  ;;  %vm542_vm6 = vcmp.eq.s32.totalorder (!%p220_p10), %v1240_v2, 5  ;;  %vm585_vm7 = vcmp.eq.s32.totalorder (!%p220_p10), %v1240_v2, 6  ;;  %vm628_vm8 = vcmp.eq.s32.totalorder (!%p220_p10), %v1240_v2, 7  ;;  %v299_v2 = vld [vmem:[%s1529_s3] sm:$0xff] (!%p220_p10) }
  0x16   : > { %s1238_s29 = scalar_select %p261_p11, %s1141_s18, 1 }
  0x17   : > { %s1155_s18 = smov [#allocation6]  }
  0x18   : > { %s931_s30 = sshll.u32 %s1238_s29, 5  ;;  %s1075_s24 = sshll.u32 %s1155_s18, 4  ;;  %s1076_s24 = int_to_ptr.vmem [resolvable:$false] %s1075_s24 }
  0x19   : > { %s1250_s7 = scalar_lea.vmem %s1527_s1, %s931_s30  ;;  %s1376_s26 = scalar_lea.vmem %s1526_s0, %s931_s30 }
  0x1a   : > { %v295_v3 = vld [vmem:[%s1250_s7] sm:$0xff]  ;;  %v296_v4 = vld [vmem:[%s1250_s7 + $0x8] sm:$0xff]  ;;  %v297_v35 = vld [vmem:[%s1250_s7 + $0x10] sm:$0xff]  ;;  %s925_s30 = sshll.u32 %s1238_s29, 3  ;;  %s258_s29 = sand.u32 1, %s1133_s16  }
  0x1b   : > { %v371_v5 = vsel %vm370_vm0, %v295_v3, 0.0  ;;  %v306_v6 = vsel %vm305_vm1, %v295_v3, 0.0  ;;  %v372_v7 = vsel %vm370_vm0, %v296_v4, 0.0  ;;  %v307_v8 = vsel %vm305_vm1, %v296_v4, 0.0  ;;  %v298_v52 = vld [vmem:[%s1250_s7 + $0x18] sm:$0xff]  ;;  %s282_s7 = scalar_lea.vmem %s1528_s2, %s925_s30  ;;  %s920_s8 = sshll.u32 %s258_s29, 3 }
  0x1c   : > { %v375_v9 = vsel %vm310_vm2, %v371_v5, 0.0  ;;  %v311_v10 = vsel %vm310_vm2, %v306_v6, 0.0  ;;  %v378_v11 = vsel %vm310_vm2, %v372_v7, 0.0  ;;  %v314_v12 = vsel %vm310_vm2, %v307_v8, 0.0  ;;  %v300_v8 = vld [vmem:[%s1529_s3 + $0x8] sm:$0xff]  ;;  %s260_s10 = scalar_lea.vmem [#allocation6], %s920_s8 }
  0x1d   : > { %376 = vadd.xlane.f32.xlu1 %v375_v9  ;;  %312 = vadd.xlane.f32.xlu0 %v311_v10  ;;  %v415_v13 = vsel %vm413_vm3, %v296_v4, 0.0  ;;  %v414_v14 = vsel %vm413_vm3, %v295_v3, 0.0  ;;  %v458_v17 = vsel %vm456_vm4, %v296_v4, 0.0  ;;  %v457_v18 = vsel %vm456_vm4, %v295_v3, 0.0  ;;  %v301_v9 = vld [vmem:[%s1529_s3 + $0x10] sm:$0xff]  ;;  %v302_v10 = vld [vmem:[%s1529_s3 + $0x18] sm:$0xff] }
  0x1e   : > { %v421_v15 = vsel %vm310_vm2, %v415_v13, 0.0  ;;  %v418_v16 = vsel %vm310_vm2, %v414_v14, 0.0  ;;  %v464_v19 = vsel %vm310_vm2, %v458_v17, 0.0  ;;  %v461_v20 = vsel %vm310_vm2, %v457_v18, 0.0  ;;  %s811_s11 = sshll.u32 %s260_s10, 4  ;;  %s797_s21 = scalar_lea.sflag [#allocation7], %s258_s29  ;;  %s1481_s11 = int_to_ptr.vmem [resolvable:$true] %s811_s11 }
  0x1f   : > { %v501_v21 = vsel %vm499_vm5, %v296_v4, 0.0  ;;  %v500_v22 = vsel %vm499_vm5, %v295_v3, 0.0  ;;  %v544_v25 = vsel %vm542_vm6, %v296_v4, 0.0  ;;  %v543_v26 = vsel %vm542_vm6, %v295_v3, 0.0  ;;  %s1071_s22 = scalar_lea.vmem %s1481_s11, 128  ;;  %p1078_p1 = scmp.lt.s32.totalorder %s1481_s11, %s1076_s24 }
  0x20   : > { %v507_v23 = vsel %vm310_vm2, %v501_v21, 0.0  ;;  %v504_v24 = vsel %vm310_vm2, %v500_v22, 0.0  ;;  %v550_v27 = vsel %vm310_vm2, %v544_v25, 0.0  ;;  %v547_v28 = vsel %vm310_vm2, %v543_v26, 0.0  ;;  %v291_v26 = vld [vmem:[%s1376_s26] sm:$0xff]  ;;  %p1072_p12 = scmp.ne.s32.totalorder %s1481_s11, %s1071_s22 }
  0x21   : > { %379 = vadd.xlane.f32.xlu1 %v378_v11  ;;  %315 = vadd.xlane.f32.xlu0 %v314_v12  ;;  %v587_v29 = vsel %vm585_vm7, %v296_v4, 0.0  ;;  %v586_v30 = vsel %vm585_vm7, %v295_v3, 0.0  ;;  %v630_v33 = vsel %vm628_vm8, %v296_v4, 0.0  ;;  %v629_v34 = vsel %vm628_vm8, %v295_v3, 0.0 }
  0x22   : > { %v593_v31 = vsel %vm310_vm2, %v587_v29, 0.0  ;;  %v590_v32 = vsel %vm310_vm2, %v586_v30, 0.0  ;;  %v636_v36 = vsel %vm310_vm2, %v630_v33, 0.0  ;;  %v633_v37 = vsel %vm310_vm2, %v629_v34, 0.0  ;;  %p1073_p13 = pnand %p1072_p12, %p1221_p4 }
  0x23   : > { %v373_v38 = vsel %vm370_vm0, %v297_v35, 0.0  ;;  %v308_v39 = vsel %vm305_vm1, %v297_v35, 0.0  ;;  %v459_v42 = vsel %vm456_vm4, %v297_v35, 0.0  ;;  %v416_v43 = vsel %vm413_vm3, %v297_v35, 0.0 }
  0x24   : > { %v381_v40 = vsel %vm310_vm2, %v373_v38, 0.0  ;;  %v317_v41 = vsel %vm310_vm2, %v308_v39, 0.0  ;;  %v467_v44 = vsel %vm310_vm2, %v459_v42, 0.0  ;;  %v424_v45 = vsel %vm310_vm2, %v416_v43, 0.0  ;;  %p1074_p0 = pneg %p1073_p13 }
  0x25   : > { %422 = vadd.xlane.f32.xlu1 %v421_v15  ;;  %419 = vadd.xlane.f32.xlu0 %v418_v16  ;;  %v545_v46 = vsel %vm542_vm6, %v297_v35, 0.0  ;;  %v502_v47 = vsel %vm499_vm5, %v297_v35, 0.0  ;;  %v631_v50 = vsel %vm628_vm8, %v297_v35, 0.0  ;;  %v588_v51 = vsel %vm585_vm7, %v297_v35, 0.0 }
  0x26   : > { %v553_v48 = vsel %vm310_vm2, %v545_v46, 0.0  ;;  %v510_v49 = vsel %vm310_vm2, %v502_v47, 0.0  ;;  %v639_v53 = vsel %vm310_vm2, %v631_v50, 0.0  ;;  %v596_v54 = vsel %vm310_vm2, %v588_v51, 0.0  ;;  %v293_v50 = vld [vmem:[%s1376_s26 + $0x10] sm:$0xff] }
  0x27   : > { %v374_v55 = vsel %vm370_vm0, %v298_v52, 0.0  ;;  %v309_v56 = vsel %vm305_vm1, %v298_v52, 0.0  ;;  %v460_v59 = vsel %vm456_vm4, %v298_v52, 0.0  ;;  %v417_v60 = vsel %vm413_vm3, %v298_v52, 0.0 }
  0x28   : > { %v384_v57 = vsel %vm310_vm2, %v374_v55, 0.0  ;;  %v320_v58 = vsel %vm310_vm2, %v309_v56, 0.0  ;;  %v470_v61 = vsel %vm310_vm2, %v460_v59, 0.0  ;;  %v427_v62 = vsel %vm310_vm2, %v417_v60, 0.0 }
  0x29   : > { %465 = vadd.xlane.f32.xlu1 %v464_v19  ;;  %462 = vadd.xlane.f32.xlu0 %v461_v20  ;;  %v546_v63 = vsel %vm542_vm6, %v298_v52, 0.0  ;;  %v503_v0 = vsel %vm499_vm5, %v298_v52, 0.0  ;;  %v632_v4 = vsel %vm628_vm8, %v298_v52, 0.0  ;;  %v589_v5 = vsel %vm585_vm7, %v298_v52, 0.0 }
  0x2a   : > { %v556_v1 = vsel %vm310_vm2, %v546_v63, 0.0  ;;  %v513_v3 = vsel %vm310_vm2, %v503_v0, 0.0  ;;  %v642_v6 = vsel %vm310_vm2, %v632_v4, 0.0  ;;  %v599_v7 = vsel %vm310_vm2, %v589_v5, 0.0 }
  0x2b   : > { %v1152_v11 = vmov -1e+30  }
  0x2c   : > { %288 = vst.msk [vmem:[#allocation3] sm:$0xff] %vm287_vm9, %v1152_v11 }
  0x2d   : > { %508 = vadd.xlane.f32.xlu1 %v507_v23  ;;  %505 = vadd.xlane.f32.xlu0 %v504_v24 }
  0x31   : > { %551 = vadd.xlane.f32.xlu1 %v550_v27  ;;  %548 = vadd.xlane.f32.xlu0 %v547_v28  ;;  %v292_v27 = vld [vmem:[%s1376_s26 + $0x8] sm:$0xff] }
  0x35   : > { %594 = vadd.xlane.f32.xlu1 %v593_v31  ;;  %591 = vadd.xlane.f32.xlu0 %v590_v32 }
  0x39   : > { %637 = vadd.xlane.f32.xlu1 %v636_v36  ;;  %634 = vadd.xlane.f32.xlu0 %v633_v37 }
  0x3d   : > { %382 = vadd.xlane.f32.xlu1 %v381_v40  ;;  %318 = vadd.xlane.f32.xlu0 %v317_v41 }
  0x41   : > { %468 = vadd.xlane.f32.xlu1 %v467_v44  ;;  %425 = vadd.xlane.f32.xlu0 %v424_v45 }
  0x45   : > { %554 = vadd.xlane.f32.xlu1 %v553_v48  ;;  %511 = vadd.xlane.f32.xlu0 %v510_v49 }
  0x49   : > { %640 = vadd.xlane.f32.xlu1 %v639_v53  ;;  %597 = vadd.xlane.f32.xlu0 %v596_v54 }
  0x4d   : > { %385 = vadd.xlane.f32.xlu1 %v384_v57  ;;  %321 = vadd.xlane.f32.xlu0 %v320_v58 }
  0x51   : > { %471 = vadd.xlane.f32.xlu1 %v470_v61  ;;  %428 = vadd.xlane.f32.xlu0 %v427_v62 }
  0x55   : > { %557 = vadd.xlane.f32.xlu1 %v556_v1  ;;  %514 = vadd.xlane.f32.xlu0 %v513_v3 }
  0x59   : > { %643 = vadd.xlane.f32.xlu1 %v642_v6  ;;  %600 = vadd.xlane.f32.xlu0 %v599_v7 }
  0x6a   : > { %338 = vperm.xlu1 %1000, %v300_v8   ;;  %v294_v8 = vld [vmem:[%s1376_s26 + $0x18] sm:$0xff]  ;;  %s1077_s26 = scalar_lea.vmem %s1076_s24, 256 }
  0x6b   : > { %p1079_p2 = scmp.lt.s32.totalorder %s1077_s26, %s1071_s22 }
  0x6d   : > { %p1080_p3 = por %p1079_p2, %p1078_p1 }
  0x6e   : > { %343 = vperm.xlu1 %1000, %v301_v9  }
  0x6f   : > { %333 = vperm.xlu0 %999, %v299_v2   ;;  %p1081_p5 = pnand %p1080_p3, %p1074_p0 }
  0x72   : > { %348 = vperm.xlu1 %1000, %v302_v10  }
  0xaa   : > { %v377_v12 = vpop.xlane.xlu1 %376  ;;  %v313_v13 = vpop.xlane.xlu0 %312 }
  0xab   : > { %v387_v30 = vadd.f32 %v377_v12, %v291_v26  ;;  %v323_v31 = vadd.f32 %v313_v13, %v291_v26 }
  0xad   : > { %1001 = vtanh.f32 %v387_v30 }
  0xae   : > { %v380_v14 = vpop.xlane.xlu1 %379  ;;  %v316_v15 = vpop.xlane.xlu0 %315  ;;  %1003 = vtanh.f32 %v323_v31 }
  0xaf   : > { %v388_v32 = vadd.f32 %v380_v14, %v292_v27  ;;  %v324_v33 = vadd.f32 %v316_v15, %v292_v27 }
  0xb1   : > { %1005 = vtanh.f32 %v388_v32 }
  0xb2   : > { %v423_v16 = vpop.xlane.xlu1 %422  ;;  %v420_v17 = vpop.xlane.xlu0 %419  ;;  %1007 = vtanh.f32 %v324_v33 }
  0xb3   : > { %v431_v36 = vadd.f32 %v423_v16, %v292_v27  ;;  %v430_v37 = vadd.f32 %v420_v17, %v291_v26 }
  0xb5   : > { %1009 = vtanh.f32 %v431_v36 }
  0xb6   : > { %v466_v18 = vpop.xlane.xlu1 %465  ;;  %v463_v19 = vpop.xlane.xlu0 %462  ;;  %1011 = vtanh.f32 %v430_v37 }
  0xb7   : > { %v474_v38 = vadd.f32 %v466_v18, %v292_v27  ;;  %v473_v39 = vadd.f32 %v463_v19, %v291_v26  ;;  %v1381_v51 = vpop.eup %1001 }
  0xb8   : > { %v1383_v53 = vpop.eup %1003 }
  0xb9   : > { %1013 = vtanh.f32 %v474_v38 }
  0xba   : > { %v509_v20 = vpop.xlane.xlu1 %508  ;;  %v506_v21 = vpop.xlane.xlu0 %505  ;;  %1015 = vtanh.f32 %v473_v39 }
  0xbb   : > { %v517_v42 = vadd.f32 %v509_v20, %v292_v27  ;;  %v516_v43 = vadd.f32 %v506_v21, %v291_v26  ;;  %v1385_v57 = vpop.eup %1005 }
  0xbc   : > { %v1387_v59 = vpop.eup %1007 }
  0xbd   : > { %1017 = vtanh.f32 %v517_v42 }
  0xbe   : > { %v552_v22 = vpop.xlane.xlu1 %551  ;;  %v549_v23 = vpop.xlane.xlu0 %548  ;;  %1019 = vtanh.f32 %v516_v43 }
  0xbf   : > { %v560_v44 = vadd.f32 %v552_v22, %v292_v27  ;;  %v559_v45 = vadd.f32 %v549_v23, %v291_v26  ;;  %v1389_v61 = vpop.eup %1009 }
  0xc0   : > { %v1391_v63 = vpop.eup %1011 }
  0xc1   : > { %1021 = vtanh.f32 %v560_v44 }
  0xc2   : > { %v595_v24 = vpop.xlane.xlu1 %594  ;;  %v592_v25 = vpop.xlane.xlu0 %591  ;;  %1023 = vtanh.f32 %v559_v45 }
  0xc3   : > { %v603_v48 = vadd.f32 %v595_v24, %v292_v27  ;;  %v602_v49 = vadd.f32 %v592_v25, %v291_v26  ;;  %v1014_v4 = vpop.eup %1013 }
  0xc4   : > { %v1393_v6 = vpop.eup %1015 }
  0xc5   : > { %1025 = vtanh.f32 %v603_v48 }
  0xc6   : > { %v638_v28 = vpop.xlane.xlu1 %637  ;;  %v635_v29 = vpop.xlane.xlu0 %634  ;;  %1027 = vtanh.f32 %v602_v49 }
  0xc7   : > { %v646_v52 = vadd.f32 %v638_v28, %v292_v27  ;;  %v645_v54 = vadd.f32 %v635_v29, %v291_v26  ;;  %v1018_v9 = vpop.eup %1017 }
  0xc8   : > { %v1396_v10 = vpop.eup %1019 }
  0xc9   : > { %1029 = vtanh.f32 %v646_v52 }
  0xca   : > { %v383_v34 = vpop.xlane.xlu1 %382  ;;  %v319_v35 = vpop.xlane.xlu0 %318  ;;  %1031 = vtanh.f32 %v645_v54 }
  0xcb   : > { %v389_v58 = vadd.f32 %v383_v34, %v293_v50  ;;  %v325_v60 = vadd.f32 %v319_v35, %v293_v50  ;;  %v1022_v14 = vpop.eup %1021 }
  0xcc   : > { %v1398_v16 = vpop.eup %1023 }
  0xcd   : > { %1033 = vtanh.f32 %v389_v58 }
  0xce   : > { %v469_v40 = vpop.xlane.xlu1 %468  ;;  %v426_v41 = vpop.xlane.xlu0 %425  ;;  %1035 = vtanh.f32 %v325_v60 }
  0xcf   : > { %v475_v62 = vadd.f32 %v469_v40, %v293_v50  ;;  %v432_v0 = vadd.f32 %v426_v41, %v293_v50  ;;  %v1026_v18 = vpop.eup %1025 }
  0xd0   : > { %v1400_v20 = vpop.eup %1027 }
  0xd1   : > { %1037 = vtanh.f32 %v475_v62 }
  0xd2   : > { %v555_v46 = vpop.xlane.xlu1 %554  ;;  %v512_v47 = vpop.xlane.xlu0 %511  ;;  %1039 = vtanh.f32 %v432_v0 }
  0xd3   : > { %v561_v5 = vadd.f32 %v555_v46, %v293_v50  ;;  %v518_v7 = vadd.f32 %v512_v47, %v293_v50  ;;  %v1030_v24 = vpop.eup %1029 }
  0xd4   : > { %v1402_v26 = vpop.eup %1031 }
  0xd5   : > { %1041 = vtanh.f32 %v561_v5 }
  0xd6   : > { %v641_v55 = vpop.xlane.xlu1 %640  ;;  %v598_v56 = vpop.xlane.xlu0 %597  ;;  %1043 = vtanh.f32 %v518_v7 }
  0xd7   : > { %v647_v2 = vadd.f32 %v641_v55, %v293_v50  ;;  %v604_v11 = vadd.f32 %v598_v56, %v293_v50  ;;  %v1034_v28 = vpop.eup %1033 }
  0xd8   : > { %v1036_v29 = vpop.eup %1035 }
  0xd9   : > { %1045 = vtanh.f32 %v647_v2 }
  0xda   : > { %v386_v1 = vpop.xlane.xlu1 %385  ;;  %v322_v3 = vpop.xlane.xlu0 %321  ;;  %1047 = vtanh.f32 %v604_v11 }
  0xdb   : > { %v390_v15 = vadd.f32 %v386_v1, %v294_v8  ;;  %v326_v17 = vadd.f32 %v322_v3, %v294_v8  ;;  %v1038_v32 = vpop.eup %1037 }
  0xdc   : > { %v1040_v35 = vpop.eup %1039 }
  0xdd   : > { %1049 = vtanh.f32 %v390_v15 }
  0xde   : > { %v472_v12 = vpop.xlane.xlu1 %471  ;;  %v429_v13 = vpop.xlane.xlu0 %428  ;;  %1051 = vtanh.f32 %v326_v17 }
  0xdf   : > { %v476_v19 = vadd.f32 %v472_v12, %v294_v8  ;;  %v433_v21 = vadd.f32 %v429_v13, %v294_v8  ;;  %v1042_v36 = vpop.eup %1041 }
  0xe0   : > { %v1044_v37 = vpop.eup %1043 }
  0xe1   : > { %1053 = vtanh.f32 %v476_v19 }
  0xe2   : > { %v558_v22 = vpop.xlane.xlu1 %557  ;;  %v515_v23 = vpop.xlane.xlu0 %514  ;;  %1055 = vtanh.f32 %v433_v21 }
  0xe3   : > { %v562_v25 = vadd.f32 %v558_v22, %v294_v8  ;;  %v519_v27 = vadd.f32 %v515_v23, %v294_v8  ;;  %v1046_v39 = vpop.eup %1045 }
  0xe4   : > { %v1048_v44 = vpop.eup %1047 }
  0xe5   : > { %1057 = vtanh.f32 %v562_v25 }
  0xe6   : > { %v644_v30 = vpop.xlane.xlu1 %643  ;;  %v601_v31 = vpop.xlane.xlu0 %600  ;;  %1059 = vtanh.f32 %v519_v27 }
  0xe7   : > { %v648_v33 = vadd.f32 %v644_v30, %v294_v8  ;;  %v605_v34 = vadd.f32 %v601_v31, %v294_v8  ;;  %v1050_v49 = vpop.eup %1049 }
  0xe8   : > { %v1052_v56 = vpop.eup %1051 }
  0xe9   : > { %1061 = vtanh.f32 %v648_v33 }
  0xea   : > { %1063 = vtanh.f32 %v605_v34  ;;  %v339_v38 = vpop.permute.xlu1 %338 }
  0xeb   : > { %v352_v40 = vmul.f32 %v1387_v59, %v339_v38  ;;  %v396_v41 = vmul.f32 %v1385_v57, %v339_v38  ;;  %v439_v42 = vmul.f32 %v1389_v61, %v339_v38  ;;  %v482_v43 = vmul.f32 %v1014_v4, %v339_v38  ;;  %v1054_v62 = vpop.eup %1053 }
  0xec   : > { %v525_v45 = vmul.f32 %v1018_v9, %v339_v38  ;;  %v568_v46 = vmul.f32 %v1022_v14, %v339_v38  ;;  %v611_v47 = vmul.f32 %v1026_v18, %v339_v38  ;;  %v654_v48 = vmul.f32 %v1030_v24, %v339_v38  ;;  %v1056_v5 = vpop.eup %1055 }
  0xed   : > { %v356_v50 = vsel %vm310_vm2, %v352_v40, 0.0  ;;  %v400_v52 = vsel %vm310_vm2, %v396_v41, 0.0  ;;  %v443_v54 = vsel %vm310_vm2, %v439_v42, 0.0  ;;  %v486_v55 = vsel %vm310_vm2, %v482_v43, 0.0 }
  0xee   : > { %v529_v57 = vsel %vm310_vm2, %v525_v45, 0.0  ;;  %v572_v58 = vsel %vm310_vm2, %v568_v46, 0.0  ;;  %v615_v59 = vsel %vm310_vm2, %v611_v47, 0.0  ;;  %v658_v60 = vsel %vm310_vm2, %v654_v48, 0.0  ;;  %v344_v61 = vpop.permute.xlu1 %343  ;;  %v334_v11 = vpop.permute.xlu0 %333 }
  0xef   : > { %v353_v0 = vmul.f32 %v1036_v29, %v344_v61  ;;  %v397_v1 = vmul.f32 %v1034_v28, %v344_v61  ;;  %v440_v3 = vmul.f32 %v1040_v35, %v344_v61  ;;  %v483_v4 = vmul.f32 %v1038_v32, %v344_v61  ;;  %v1058_v12 = vpop.eup %1057 }
  0xf0   : > { %v526_v7 = vmul.f32 %v1044_v37, %v344_v61  ;;  %v569_v8 = vmul.f32 %v1042_v36, %v344_v61  ;;  %v612_v9 = vmul.f32 %v1048_v44, %v344_v61  ;;  %v655_v2 = vmul.f32 %v1046_v39, %v344_v61  ;;  %v1060_v18 = vpop.eup %1059 }
  0xf1   : > { %v358_v13 = vsel %vm310_vm2, %v353_v0, 0.0  ;;  %v402_v14 = vsel %vm310_vm2, %v397_v1, 0.0  ;;  %v445_v15 = vsel %vm310_vm2, %v440_v3, 0.0  ;;  %v488_v17 = vsel %vm310_vm2, %v483_v4, 0.0 }
  0xf2   : > { %v531_v19 = vsel %vm310_vm2, %v526_v7, 0.0  ;;  %v574_v21 = vsel %vm310_vm2, %v569_v8, 0.0  ;;  %v1422_v22 = vsel %vm310_vm2, %v612_v9, 0.0  ;;  %v1425_v23 = vsel %vm310_vm2, %v655_v2, 0.0  ;;  %v349_v39 = vpop.permute.xlu1 %348 }
  0xf3   : > { %v1427_v24 = vpop.eup %1061  ;;  %v351_v25 = vmul.f32 %v1383_v53, %v334_v11  ;;  %v395_v27 = vmul.f32 %v1381_v51, %v334_v11  ;;  %v438_v28 = vmul.f32 %v1391_v63, %v334_v11  ;;  %v481_v29 = vmul.f32 %v1393_v6, %v334_v11 }
  0xf4   : > { %v1064_v30 = vpop.eup %1063  ;;  %v524_v31 = vmul.f32 %v1396_v10, %v334_v11  ;;  %v567_v32 = vmul.f32 %v1398_v16, %v334_v11  ;;  %v610_v33 = vmul.f32 %v1400_v20, %v334_v11  ;;  %v653_v34 = vmul.f32 %v1402_v26, %v334_v11 }
  0xf5   : > { %v355_v35 = vsel %vm310_vm2, %v351_v25, 0.0  ;;  %v399_v36 = vsel %vm310_vm2, %v395_v27, 0.0  ;;  %v442_v53 = vsel %vm310_vm2, %v438_v28, 0.0  ;;  %v485_v51 = vsel %vm310_vm2, %v481_v29, 0.0 }
  0xf6   : > { %v357_v63 = vadd.f32 %v356_v50, %v355_v35  ;;  %v401_v37 = vadd.f32 %v400_v52, %v399_v36  ;;  %v444_v6 = vadd.f32 %v443_v54, %v442_v53  ;;  %v487_v38 = vadd.f32 %v486_v55, %v485_v51 }
  0xf7   : > { %v528_v10 = vsel %vm310_vm2, %v524_v31, 0.0  ;;  %v571_v16 = vsel %vm310_vm2, %v567_v32, 0.0  ;;  %v614_v20 = vsel %vm310_vm2, %v610_v33, 0.0  ;;  %v657_v26 = vsel %vm310_vm2, %v653_v34, 0.0 }
  0xf8   : > { %v530_v40 = vadd.f32 %v529_v57, %v528_v10  ;;  %v573_v41 = vadd.f32 %v572_v58, %v571_v16  ;;  %v616_v42 = vadd.f32 %v615_v59, %v614_v20  ;;  %v659_v43 = vadd.f32 %v658_v60, %v657_v26 }
  0xf9   : > { %v354_v44 = vmul.f32 %v1052_v56, %v349_v39  ;;  %v359_v45 = vadd.f32 %v358_v13, %v357_v63  ;;  %v398_v46 = vmul.f32 %v1050_v49, %v349_v39  ;;  %v403_v47 = vadd.f32 %v402_v14, %v401_v37 }
  0xfa   : > { %v441_v48 = vmul.f32 %v1056_v5, %v349_v39  ;;  %v446_v50 = vadd.f32 %v445_v15, %v444_v6  ;;  %v484_v52 = vmul.f32 %v1054_v62, %v349_v39  ;;  %v489_v54 = vadd.f32 %v488_v17, %v487_v38 }
  0xfb   : > { %v360_v55 = vsel %vm310_vm2, %v354_v44, 0.0  ;;  %v404_v61 = vsel %vm310_vm2, %v398_v46, 0.0  ;;  %v527_v0 = vmul.f32 %v1060_v18, %v349_v39  ;;  %v532_v1 = vadd.f32 %v531_v19, %v530_v40 }
  0xfc   : > { %v361_v3 = vadd.f32 %v360_v55, %v359_v45  ;;  %v405_v4 = vadd.f32 %v404_v61, %v403_v47  ;;  %v447_v57 = vsel %vm310_vm2, %v441_v48, 0.0  ;;  %v490_v58 = vsel %vm310_vm2, %v484_v52, 0.0 }
  0xfd   : > { %v448_v56 = vadd.f32 %v447_v57, %v446_v50  ;;  %v491_v59 = vadd.f32 %v490_v58, %v489_v54  ;;  %v533_v49 = vsel %vm310_vm2, %v527_v0, 0.0  ;;  %v570_v60 = vmul.f32 %v1058_v12, %v349_v39 }
  0xfe   : > { %v362_v5 = vrot.slane %v361_v3, 4  ;;  %v406_v62 = vrot.slane %v405_v4, 4  ;;  %v534_v7 = vadd.f32 %v533_v49, %v532_v1  ;;  %v575_v8 = vadd.f32 %v574_v21, %v573_v41 }
  0xff   : > { %v449_v9 = vrot.slane %v448_v56, 4  ;;  %v492_v2 = vrot.slane %v491_v59, 4  ;;  %v576_v11 = vsel %vm310_vm2, %v570_v60, 0.0  ;;  %v613_v13 = vmul.f32 %v1064_v30, %v349_v39  ;;  %v673_v60 = vld [vmem:[#allocation3] sm:$0xff] }
 0x100   : > { %v363_v14 = vadd.f32 %v362_v5, %v361_v3  ;;  %v407_v15 = vadd.f32 %v406_v62, %v405_v4  ;;  %v535_v17 = vrot.slane %v534_v7, 4  ;;  %v577_v18 = vadd.f32 %v576_v11, %v575_v8 }
 0x101   : > { %v450_v19 = vadd.f32 %v449_v9, %v448_v56  ;;  %v493_v25 = vadd.f32 %v492_v2, %v491_v59  ;;  %v618_v27 = vadd.f32 %v1422_v22, %v616_v42  ;;  %v619_v12 = vsel %vm310_vm2, %v613_v13, 0.0  ;;  %v672_v9 = vld [vmem:[%s282_s7] sm:$0xff] }
 0x102   : > { %v364_v28 = vrot.slane %v363_v14, 2  ;;  %v408_v29 = vrot.slane %v407_v15, 2  ;;  %v536_v31 = vadd.f32 %v535_v17, %v534_v7  ;;  %v578_v21 = vrot.slane %v577_v18, 4 }
 0x103   : > { %v451_v32 = vrot.slane %v450_v19, 2  ;;  %v494_v33 = vrot.slane %v493_v25, 2  ;;  %v620_v34 = vadd.f32 %v619_v12, %v618_v27  ;;  %v656_v35 = vmul.f32 %v1427_v24, %v349_v39 }
 0x104   : > { %v365_v30 = vadd.f32 %v364_v28, %v363_v14  ;;  %v409_v36 = vadd.f32 %v408_v29, %v407_v15  ;;  %v537_v53 = vrot.slane %v536_v31, 2  ;;  %v579_v51 = vadd.f32 %v578_v21, %v577_v18 }
 0x105   : > { %v452_v63 = vadd.f32 %v451_v32, %v450_v19  ;;  %v495_v37 = vadd.f32 %v494_v33, %v493_v25  ;;  %v621_v6 = vrot.slane %v620_v34, 4  ;;  %v661_v22 = vadd.f32 %v1425_v23, %v659_v43 }
 0x106   : > { %v366_v38 = vrot.slane %v365_v30, 1  ;;  %v410_v10 = vrot.slane %v409_v36, 1  ;;  %v538_v16 = vadd.f32 %v537_v53, %v536_v31  ;;  %v580_v20 = vrot.slane %v579_v51, 2 }
 0x107   : > { %v453_v26 = vrot.slane %v452_v63, 1  ;;  %v496_v40 = vrot.slane %v495_v37, 1  ;;  %v622_v41 = vadd.f32 %v621_v6, %v620_v34  ;;  %v662_v42 = vsel %vm310_vm2, %v656_v35, 0.0 }
 0x108   : > { %v367_v44 = vadd.f32 %v366_v38, %v365_v30  ;;  %v411_v24 = vadd.f32 %v410_v10, %v409_v36  ;;  %v539_v39 = vrot.slane %v538_v16, 1  ;;  %v581_v45 = vadd.f32 %v580_v20, %v579_v51 }
 0x109   : > { %v454_v46 = vadd.f32 %v453_v26, %v452_v63  ;;  %v497_v47 = vadd.f32 %v496_v40, %v495_v37  ;;  %v623_v48 = vrot.slane %v622_v41, 2  ;;  %v663_v50 = vadd.f32 %v662_v42, %v661_v22 }
 0x10a   : > { %369 = vst.msk [vmem:[#allocation2] sm:$0x1] %vm368_vm10, %v367_v44  ;;  %412 = vst.msk [vmem:[#allocation2 + $0x1] sm:$0x1] %vm368_vm10, %v411_v24  ;;  %v540_v23 = vadd.f32 %v539_v39, %v538_v16  ;;  %v582_v43 = vrot.slane %v581_v45, 1  ;;  %v1153_v49 = vmov 0.0  }
 0x10b   : > { %455 = vst.msk [vmem:[#allocation2 + $0x2] sm:$0x1] %vm368_vm10, %v454_v46  ;;  %498 = vst.msk [vmem:[#allocation2 + $0x3] sm:$0x1] %vm368_vm10, %v497_v47  ;;  %v624_v52 = vadd.f32 %v623_v48, %v622_v41  ;;  %v664_v54 = vrot.slane %v663_v50, 4  ;;  %935 = vmatprep.subr.mxu0 %v1153_v49  ;;  %937 = vmatprep.mubr.msk.f32.mxu0 %vm1154_vm11, %v1153_v49 }
 0x10c   : > { %541 = vst.msk [vmem:[#allocation2 + $0x4] sm:$0x1] %vm368_vm10, %v540_v23  ;;  %v583_v55 = vadd.f32 %v582_v43, %v581_v45  ;;  %936 = vmatpush3.msra.mxu0 %v672_v9 }
 0x10d   : > { %v625_v61 = vrot.slane %v624_v52, 1  ;;  %v665_v0 = vadd.f32 %v664_v54, %v663_v50  ;;  %289 = vst.msk [vmem:[#allocation4] sm:$0xff] %vm287_vm9, %v1153_v49 }
 0x10e   : > { %584 = vst.msk [vmem:[#allocation2 + $0x5] sm:$0x1] %vm368_vm10, %v583_v55 }
 0x10f   : > { %v626_v1 = vadd.f32 %v625_v61, %v624_v52  ;;  %v666_v3 = vrot.slane %v665_v0, 2 }
 0x111   : > { %627 = vst.msk [vmem:[#allocation2 + $0x6] sm:$0x1] %vm368_vm10, %v626_v1  ;;  %v667_v4 = vadd.f32 %v666_v3, %v665_v0 }
 0x113   : > { %v668_v57 = vrot.slane %v667_v4, 1 }
 0x114   : > { %v689_v18 = vld [vmem:[#allocation4] sm:$0xff] }
 0x115   : > { %v669_v58 = vadd.f32 %v668_v57, %v667_v4 }
 0x117   : > { %670 = vst.msk [vmem:[#allocation2 + $0x7] sm:$0x1] %vm368_vm10, %v669_v58 }
 0x11e   : > { %v671_v56 = vld [vmem:[#allocation2] sm:$0xff] }
 0x11f   : > { %v674_v59 = vsel %vm310_vm2, %v671_v56, -inf }
 0x120   : > { %675 = vmax.xlane.f32.xlu1 %v674_v59 }
 0x1ad   : > { %v676_v5 = vpop.xlane.xlu1 %675 }
 0x1ae   : > { %v677_v62 = vmax.f32 %v673_v60, %v676_v5 }
 0x1b0   : > { %v678_v7 = vsub.f32 %v673_v60, %v677_v62  ;;  %779 = vst.msk [vmem:[#allocation3] sm:$0xff] %vm287_vm9, %v677_v62  ;;  %683 = vperm.xlu0 %999, %v677_v62  }
 0x1b2   : > { %v679_v8 = vmul.f32 1.442695, %v678_v7 }
 0x1b4   : > { %1065 = vpow2.f32 %v679_v8 }
 0x1be   : > { %v1066_v2 = vpop.eup %1065 }
 0x1bf   : > { %700 = vperm.xlu1 %1000, %v1066_v2   ;;  %v690_v19 = vmul.f32 %v1066_v2, %v689_v18 }
 0x22f   : > { %v684_v11 = vpop.permute.xlu0 %683 }
 0x230   : > { %v686_v13 = vsub.f32 %v671_v56, %v684_v11 }
 0x232   : > { %v687_v14 = vmul.f32 1.442695, %v686_v13 }
 0x234   : > { %1067 = vpow2.f32 %v687_v14 }
 0x23e   : > { %v1068_v15 = vpop.eup %1067  ;;  %v701_v34 = vpop.permute.xlu1 %700 }
 0x23f   : > { %938 = vmatmul.mubr.msk.f32.vlgmr.msra.gmra.mrb[0].mxu0 %vm310_vm2, %v1068_v15  ;;  %v691_v17 = vsel %vm310_vm2, %v1068_v15, 0.0  ;;  %v703_v35 = vmul.f32 0.0, %v701_v34 }
 0x240   : > { %692 = vadd.xlane.f32.xlu0 %v691_v17 }
 0x2cd   : > { %v693_v25 = vpop.xlane.xlu0 %692 }
 0x2ce   : > { %v694_v27 = vadd.f32 %v693_v25, %v690_v19 }
 0x2d0   : > { %696 = vst.msk [vmem:[#allocation4] sm:$0xff] %vm287_vm9, %v694_v27 }
 0x2d7   : > { %v783_v12 = vld [vmem:[#allocation4] sm:$0xff] }
 0x2d8   : > { %1069 = vrcp.f32 %v783_v12 }
 0x2e2   : > { %v1070_v28 = vpop.eup %1069 }
 0x2e3   : > { %v785_v29 = vmul.f32 %v1070_v28, %v783_v12 }
 0x2e5   : > { %v786_v31 = vsub.f32 2.0, %v785_v29 }
 0x2e7   : > { %v787_v21 = vmul.f32 %v1070_v28, %v786_v31 }
 0x2e9   : > { %791 = vperm.xlu1 %1000, %v787_v21  }
 0x312   : > { %v773_v32 = vpop.f32.mrb[0].mxu0 }
 0x313   : > { %v939_v33 = vpop.f32.mrb[1].mxu0  ;;  %v777_v30 = vadd.f32 %v773_v32, %v703_v35 }
 0x368   : > { %v792_v36 = vpop.permute.xlu1 %791 }
 0x369   : > { %v794_v53 = vmul.f32 %v792_v36, %v777_v30 }
 0x36b   : > { %795 = vst [vmem:[%s260_s10] sm:$0xff] %v794_v53 }
 0x36c   : > { %1084 = shalt.err (!%p1081_p5)
}
 0x36d   : > { %s1085_s30 = scalar_lea.hbm %s1479_s14, 128  ;;  %s1089_s7 = scalar_lea.hbm %s1530_s4, 256 }
 0x36e   : > { %p1086_p6 = scmp.ne.s32.totalorder %s1479_s14, %s1085_s30  ;;  %p1090_p10 = scmp.lt.u32.totalorder %s1479_s14, %s1530_s4 }
 0x36f   : > { %p1091_p11 = scmp.lt.u32.totalorder %s1089_s7, %s1085_s30  ;;  %p1093_p13 = scmp.lt.u32.totalorder %s1085_s30, %s1479_s14 }
 0x370   : > { %p1087_p7 = pnand %p1086_p6, %p1221_p4 }
 0x371   : > { %p1092_p12 = por %p1091_p11, %p1090_p10 }
 0x372   : > { %p1088_p9 = pneg %p1087_p7 }
 0x373   : > { %p1094_p0 = por %p1093_p13, %p1092_p12 }
 0x375   : > { %p1095_p1 = pnand %p1094_p0, %p1088_p9 }
 0x377   : > { %1098 = shalt.err (!%p1095_p1)
}
 0x378   : > { %940 = dma.vmem_to_hbm [thread:$0]  (%p1221_p4), %s1481_s11, 128, %s1479_s14, %s797_s21  }
 0x379 PF: > { %p946_p2 = scmp.ge.s32.totalorder %s1149_s20, 2  ;;  %s823_s9 = sand.u32 1, %s1129_s15  }
 0x37a   : > { %s824_s10 = scalar_lea.sflag [#allocation7], %s823_s9 }
 0x37b   : > { %p943_p3 = pnand %p946_p2, %p1228_p8 }
 0x37d   : > { %1124 = dma.done.wait (!%p943_p3), %s824_s10, 128  }
 0x37e   : > { %1126 = vsyncadd (!%p943_p3), %s824_s10, 4294967168  ;;  %s17_s20 = sadd.s32 1, %s1149_s20   ;;  %s1533_s15 = smov %s1133_s16 }
 0x37f   : > { %p14_p5 = scmp.ge.s32.totalorder %s17_s20, 4   ;;  %s1534_s16 = smov %s1137_s17 }
 0x380   : > { %s1535_s17 = smov %s1234_s28  ;;  %s1536_s18 = smov %s1145_s19 }
 0x381   : > { %s1537_s19 = smov %s1539_s23  ;;  %16 = sbr.rel (!%p14_p5) target bundleno = 4 (0x4), region = 85 }
 0x388   :  { %829 = vsyncpa [#allocation7], 1 }
 0x389   :  { %831 = vsyncpa [#allocation7 + $0x1], 1 }

</bundles_post_ra>
